<compile_context>
chip_gen: v5e
topology: v5e:2x2
jax: 0.10.0
libtpu: 0.0.40
codegen_flags: <defaults>
</compile_context>

<pallas_src>
import functools

import jax
import jax.numpy as jnp
from jax.experimental import pallas as pl
from jax.experimental.pallas import tpu as pltpu


# ---------------------------------------------------------------------------
# Helpers
# ---------------------------------------------------------------------------
def _round_up(x, m):
    return ((x + m - 1) // m) * m


def _prep_channels_first(x, tile_n):
    """(1, C, W, L, H) -> (C, N) channels-first view.  Free reshape, NO pad."""
    _, c, w, l, h = x.shape
    n = w * l * h
    x_cn = x.reshape(c, n)                      # C already leading: no copy
    tn = min(tile_n, _round_up(n, 128))         # lane-multiple tile width
    return x_cn, (w, l, h), n, tn


def _compiler_params(vmem_limit_bytes):
    return pltpu.CompilerParams(
        dimension_semantics=("parallel",),      # shards grid over v7x's 2 TCs
        vmem_limit_bytes=vmem_limit_bytes)


# ---------------------------------------------------------------------------
# Kernels
# ---------------------------------------------------------------------------
def _mlp_head_kernel(x_ref, w_ref, b_ref, o_ref, *, eps):
    """Folded LayerNorm(C) + Linear(C->K) on a channels-first voxel tile.

    x_ref: (C, TN)  input tile (lane axis = voxels)
    w_ref: (K, C)   folded weight  lin_w * gamma        (resident)
    b_ref: (K, 1)   folded bias    lin_w @ beta + lin_b (resident)
    o_ref: (K, TN)  output tile (lane-dense stores)
    """
    x = x_ref[...].astype(jnp.float32)                       # (C, TN)
    c = x.shape[0]
    # Column-wise LayerNorm statistics over C, computed on the (otherwise
    # idle) MXU via a ones-row matmul instead of cross-sublane reductions.
    # (8, C) keeps the matmul M-dim sublane-aligned; rows are identical.
    inv_c = jnp.full((8, c), 1.0 / c, jnp.float32)
    mean = jnp.dot(inv_c, x, preferred_element_type=jnp.float32)[0:1]       # (1, TN)
    xc = x - mean
    var = jnp.dot(inv_c, xc * xc, preferred_element_type=jnp.float32)[0:1]  # (1, TN)
    inv = jax.lax.rsqrt(var + eps)                                          # EUP
    # gamma/beta/bias are folded into w_ref/b_ref; the per-column 1/std is a
    # scalar per voxel, so it commutes past the matmul and is applied to the
    # half-size (K, TN) result instead of normalizing the (C, TN) tile.
    proj = jnp.dot(w_ref[...], xc, preferred_element_type=jnp.float32)      # (K, TN)
    o_ref[...] = (proj * inv + b_ref[...]).astype(o_ref.dtype)


def _conv_head_kernel(x_ref, w_ref, o_ref):
    """1x1x1 Conv3d (no bias) == per-voxel matmul C -> K, channels-first.

    x_ref: (C, TN), w_ref: (K, C), o_ref: (K, TN)
    """
    y = jnp.dot(w_ref[...], x_ref[...].astype(jnp.float32),
                preferred_element_type=jnp.float32)
    o_ref[...] = y.astype(o_ref.dtype)


# ---------------------------------------------------------------------------
# Wrappers (Header.forward)
# ---------------------------------------------------------------------------
def header_forward_mlp(x, ln_gamma, ln_beta, lin_w, lin_b, *, tile_n=16384,
                       eps=1e-5, vmem_limit_bytes=32 << 20):
    """Header(version='mlp').forward.  x: (1, C, W, L, H)."""
    x_cn, dims, n, tn = _prep_channels_first(x, tile_n)
    c = x_cn.shape[0]
    k = lin_w.shape[0]

    # Fold LN affine and Linear bias into the projection (wrapper-side, tiny).
    w32 = lin_w.reshape(k, c).astype(jnp.float32)
    w_fold = w32 * ln_gamma.reshape(1, c).astype(jnp.float32)           # (K, C)
    b_fold = (w32 @ ln_beta.reshape(c).astype(jnp.float32)
              + lin_b.reshape(k).astype(jnp.float32)).reshape(k, 1)     # (K, 1)

    y = pl.pallas_call(
        functools.partial(_mlp_head_kernel, eps=eps),
        out_shape=jax.ShapeDtypeStruct((k, n), x.dtype),
        grid_spec=pltpu.PrefetchScalarGridSpec(
            num_scalar_prefetch=0,
            grid=(pl.cdiv(n, tn),),              # ragged last block is masked
            in_specs=[
                pl.BlockSpec((c, tn), lambda i: (0, i)),   # voxel tile
                pl.BlockSpec((k, c), lambda i: (0, 0)),    # W'   (resident)
                pl.BlockSpec((k, 1), lambda i: (0, 0)),    # b'   (resident)
            ],
            out_specs=pl.BlockSpec((k, tn), lambda i: (0, i)),
        ),
        compiler_params=_compiler_params(vmem_limit_bytes),
    )(x_cn, w_fold, b_fold)

    w, l, h = dims
    return {"ssc_logit": y.reshape(k, w, l, h)[None]}


def header_forward_conv(x, conv_w, *, tile_n=16384, vmem_limit_bytes=32 << 20):
    """Header(version='conv').forward.  x: (1, C, W, L, H),
    conv_w: (K, C, 1, 1, 1) Conv3d weight (no bias)."""
    x_cn, dims, n, tn = _prep_channels_first(x, tile_n)
    c = x_cn.shape[0]
    k = conv_w.shape[0]
    w2 = conv_w.reshape(k, c).astype(jnp.float32)

    y = pl.pallas_call(
        _conv_head_kernel,
        out_shape=jax.ShapeDtypeStruct((k, n), x.dtype),
        grid_spec=pltpu.PrefetchScalarGridSpec(
            num_scalar_prefetch=0,
            grid=(pl.cdiv(n, tn),),
            in_specs=[
                pl.BlockSpec((c, tn), lambda i: (0, i)),
                pl.BlockSpec((k, c), lambda i: (0, 0)),
            ],
            out_specs=pl.BlockSpec((k, tn), lambda i: (0, i)),
        ),
        compiler_params=_compiler_params(vmem_limit_bytes),
    )(x_cn, w2)

    w, l, h = dims
    return {"ssc_logit": y.reshape(k, w, l, h)[None]}


# ---------------------------------------------------------------------------
# Reference (plain JAX, mirrors the PyTorch forward) for sanity checking
# ---------------------------------------------------------------------------
def _ref_mlp(x, g, b, w, bias, eps=1e-5):
    _, c, W, L, H = x.shape
    xf = jnp.transpose(x[0], (1, 2, 3, 0)).reshape(-1, c).astype(jnp.float32)
    mean = xf.mean(-1, keepdims=True)
    var = ((xf - mean) ** 2).mean(-1, keepdims=True)
    xn = (xf - mean) / jnp.sqrt(var + eps) * g + b
    y = xn @ w.T + bias
    return jnp.transpose(y.reshape(W, L, H, w.shape[0]), (3, 0, 1, 2))[None]


def _ref_conv(x, w):
    _, c, W, L, H = x.shape
    xf = jnp.transpose(x[0], (1, 2, 3, 0)).reshape(-1, c).astype(jnp.float32)
    y = xf @ w.reshape(w.shape[0], c).T
    return jnp.transpose(y.reshape(W, L, H, w.shape[0]), (3, 0, 1, 2))[None]


# ---------------------------------------------------------------------------
if __name__ == "__main__":
    key = jax.random.PRNGKey(0)
    geo_feat_channels = 32
    class_num = 16
    W, L, H = 8, 8, 5        # N = 320: exercises the ragged (partial) last tile

    k_x, k_g, k_b, k_w, k_lb, k_cw = jax.random.split(key, 6)
    x = jax.random.normal(k_x, (1, geo_feat_channels, W, L, H), jnp.float32)

    # version='mlp' params: LayerNorm(C) + Linear(C, K)
    ln_gamma = 1.0 + 0.1 * jax.random.normal(k_g, (geo_feat_channels,), jnp.float32)
    ln_beta = 0.1 * jax.random.normal(k_b, (geo_feat_channels,), jnp.float32)
    lin_w = 0.1 * jax.random.normal(k_w, (class_num, geo_feat_channels), jnp.float32)
    lin_b = 0.1 * jax.random.normal(k_lb, (class_num,), jnp.float32)

    # version='conv' params: Conv3d(C, K, kernel_size=1, bias=False)
    conv_w = 0.1 * jax.random.normal(k_cw, (class_num, geo_feat_channels, 1, 1, 1),
                                     jnp.float32)

    out_mlp = header_forward_mlp(x, ln_gamma, ln_beta, lin_w, lin_b)
    out_conv = header_forward_conv(x, conv_w)
    jax.block_until_ready(out_mlp["ssc_logit"])
    jax.block_until_ready(out_conv["ssc_logit"])

    ref_mlp = _ref_mlp(x, ln_gamma, ln_beta, lin_w, lin_b)
    ref_conv = _ref_conv(x, conv_w)

    assert out_mlp["ssc_logit"].shape == (1, class_num, W, L, H)
    assert out_conv["ssc_logit"].shape == (1, class_num, W, L, H)
    assert jnp.allclose(out_mlp["ssc_logit"], ref_mlp, atol=1e-4, rtol=1e-4)
    assert jnp.allclose(out_conv["ssc_logit"], ref_conv, atol=1e-4, rtol=1e-4)

    # Optional bf16 activation path (HBM-bound kernel: halves dominant traffic).
    x_bf16 = x.astype(jnp.bfloat16)
    out_bf16 = header_forward_mlp(x_bf16, ln_gamma, ln_beta, lin_w, lin_b)
    jax.block_until_ready(out_bf16["ssc_logit"])
    assert out_bf16["ssc_logit"].dtype == jnp.bfloat16
    assert jnp.allclose(out_bf16["ssc_logit"].astype(jnp.float32), ref_mlp,
                        atol=5e-2, rtol=5e-2)

    print("KERNEL_OK")
</pallas_src>

<mosaic_0001>
module attributes {stable_mosaic.version = 11 : i64} {
  func.func @_mlp_head_kernel(%arg0: i32, %arg1: memref<32x384xf32, #tpu.memory_space<vmem>>, %arg2: memref<16x32xf32, #tpu.memory_space<vmem>>, %arg3: memref<16x1xf32, #tpu.memory_space<vmem>>, %arg4: memref<16x384xf32, #tpu.memory_space<vmem>>) attributes {dimension_semantics = [#tpu.dimension_semantics<parallel>], iteration_bounds = array<i64: 1>, scalar_prefetch = 0 : i64, scratch_operands = 0 : i64, tpu.core_type = #tpu.core_type<tc>, window_params = [{transform_indices = @transform_0, window_bounds = array<i64: 32, 384>}, {pipeline_mode = #tpu.pipeline_mode<synchronous>, transform_indices = @transform_1, window_bounds = array<i64: 16, 32>}, {pipeline_mode = #tpu.pipeline_mode<synchronous>, transform_indices = @transform_2, window_bounds = array<i64: 16, 1>}, {transform_indices = @transform_3, window_bounds = array<i64: 16, 384>}]} {
    %c0 = arith.constant 0 : index
    %c0_0 = arith.constant 0 : index
    %0 = vector.load %arg1[%c0, %c0_0] : memref<32x384xf32, #tpu.memory_space<vmem>>, vector<32x384xf32>
    %cst = arith.constant 3.125000e-02 : f32
    %1 = vector.broadcast %cst : f32 to vector<8x32xf32>
    %cst_1 = arith.constant dense<0.000000e+00> : vector<8x384xf32>
    %2 = tpu.matmul %1, %0, %cst_1 {dimension_numbers = #tpu.dot_dimension_numbers<[1], [0], [0], [1], [0, 0, 1, 1], [], []>} : vector<8x32xf32>, vector<32x384xf32>, vector<8x384xf32> -> vector<8x384xf32>
    %3 = vector.extract_strided_slice %2 {offsets = [0, 0], sizes = [1, 384], strides = [1, 1]} : vector<8x384xf32> to vector<1x384xf32>
    %4 = vector.broadcast %3 : vector<1x384xf32> to vector<32x384xf32>
    %5 = arith.subf %0, %4 : vector<32x384xf32>
    %6 = arith.mulf %5, %5 : vector<32x384xf32>
    %cst_2 = arith.constant dense<0.000000e+00> : vector<8x384xf32>
    %7 = tpu.matmul %1, %6, %cst_2 {dimension_numbers = #tpu.dot_dimension_numbers<[1], [0], [0], [1], [0, 0, 1, 1], [], []>} : vector<8x32xf32>, vector<32x384xf32>, vector<8x384xf32> -> vector<8x384xf32>
    %8 = vector.extract_strided_slice %7 {offsets = [0, 0], sizes = [1, 384], strides = [1, 1]} : vector<8x384xf32> to vector<1x384xf32>
    %cst_3 = arith.constant 9.99999974E-6 : f32
    %9 = vector.broadcast %cst_3 : f32 to vector<1x384xf32>
    %10 = arith.addf %8, %9 : vector<1x384xf32>
    %11 = math.rsqrt %10 : vector<1x384xf32>
    %c0_4 = arith.constant 0 : index
    %c0_5 = arith.constant 0 : index
    %12 = vector.load %arg2[%c0_4, %c0_5] : memref<16x32xf32, #tpu.memory_space<vmem>>, vector<16x32xf32>
    %cst_6 = arith.constant dense<0.000000e+00> : vector<16x384xf32>
    %13 = tpu.matmul %12, %5, %cst_6 {dimension_numbers = #tpu.dot_dimension_numbers<[1], [0], [0], [1], [0, 0, 1, 1], [], []>} : vector<16x32xf32>, vector<32x384xf32>, vector<16x384xf32> -> vector<16x384xf32>
    %14 = vector.broadcast %11 : vector<1x384xf32> to vector<16x384xf32>
    %15 = arith.mulf %13, %14 : vector<16x384xf32>
    %c0_7 = arith.constant 0 : index
    %c0_8 = arith.constant 0 : index
    %16 = vector.load %arg3[%c0_7, %c0_8] : memref<16x1xf32, #tpu.memory_space<vmem>>, vector<16x1xf32>
    %17 = vector.broadcast %16 : vector<16x1xf32> to vector<16x384xf32>
    %18 = arith.addf %15, %17 : vector<16x384xf32>
    %c0_9 = arith.constant 0 : index
    %c0_10 = arith.constant 0 : index
    %19 = vector.load %arg4[%c0_9, %c0_10] : memref<16x384xf32, #tpu.memory_space<vmem>>, vector<16x384xf32>
    tpu.vector_store %arg4[%c0_9, %c0_10], %18 {strides = array<i32>} : memref<16x384xf32, #tpu.memory_space<vmem>>, vector<16x384xf32>,
    return
  }
  func.func @transform_0(%arg0: i32) -> (i32, i32) {
    %c0_i32 = arith.constant 0 : i32
    %c0_i32_0 = arith.constant 0 : i32
    return %c0_i32, %arg0 : i32, i32
  }
  func.func @transform_1(%arg0: i32) -> (i32, i32) {
    %c0_i32 = arith.constant 0 : i32
    %c0_i32_0 = arith.constant 0 : i32
    %c0_i32_1 = arith.constant 0 : i32
    return %c0_i32, %c0_i32_0 : i32, i32
  }
  func.func @transform_2(%arg0: i32) -> (i32, i32) {
    %c0_i32 = arith.constant 0 : i32
    %c0_i32_0 = arith.constant 0 : i32
    %c0_i32_1 = arith.constant 0 : i32
    return %c0_i32, %c0_i32_0 : i32, i32
  }
  func.func @transform_3(%arg0: i32) -> (i32, i32) {
    %c0_i32 = arith.constant 0 : i32
    %c0_i32_0 = arith.constant 0 : i32
    return %c0_i32, %arg0 : i32, i32
  }
}

</mosaic_0001>

<bundles_post_ra>
// kernel: tpu_custom_call.1
= control target key start
LH: loop header
LB: loop body
LE: loop exit
PB: predicated region body
PF: predicated region fallthrough
CT: control target
= control target key end

     0   :  { %8 = vsyncpa [#allocation3], 0  ;;  %s501_s0 = inlined_call_operand.hbm [shape: f32[32,320], index: 0, kind: input, shape index: {}]   ;;  %s502_s1 = inlined_call_operand.vmem [shape: f32[16,32], index: 1, kind: input, shape index: {}]   ;;  %s503_s2 = inlined_call_operand.vmem [shape: f32[16,1], index: 2, kind: input, shape index: {}]   ;;  %s504_s3 = inlined_call_operand.hbm [shape: f32[16,320], index: 3, kind: output, shape index: {}]  }
   0x1   :  { %9 = vsyncpa [#allocation4], 0  ;;  %s14_s14 = sshll.u32 %s501_s0, 4  ;;  %s433_s15 = smov [#allocation2]   ;;  %s15_s14 = int_to_ptr.hbm [resolvable:$true] %s14_s14 }
   0x2   :  { %s16_s16 = sshll.u32 %s433_s15, 4  ;;  %s434_s17 = smov 384   ;;  %s17_s16 = int_to_ptr.vmem [resolvable:$true] %s16_s16 }
   0x3   :  { %s435_s18 = smov 24  }
   0x4   :  { %22 = dma.hbm_to_vmem [thread:$0]  %s15_s14, 1536, %s17_s16, [#allocation3], %s434_s17, %s434_s17, %s435_s18  }
   0x5   :  { %429 = dma.done.wait [#allocation3], 1536  }
   0x6   :  { %430 = vsyncadd [#allocation3], 4294965760  ;;  %v40_v0 = vld [vmem:[#allocation2 + $0x48] sm:$0xff]  ;;  %v42_v1 = vld [vmem:[#allocation2 + $0x58] sm:$0xff]  ;;  %vm43_vm0 = vcmask 261120   ;;  %v436_v9 = vmov 0.03125  }
   0x7   :  { %v37_v2 = vld [vmem:[#allocation2 + $0x30] sm:$0xff]  ;;  %59 = vmatpush.msra.mxu1 %v40_v0  ;;  %99 = vmatpush.msra.mxu2 %v42_v1  ;;  %v39_v3 = vld [vmem:[#allocation2 + $0x40] sm:$0xff]  ;;  %v34_v4 = vld [vmem:[#allocation2 + $0x18] sm:$0xff]  ;;  %v437_v15 = vmov 0   ;;  %s343_s28 = sshll.u32 %s504_s3, 4  ;;  %s344_s28 = int_to_ptr.hbm [resolvable:$true] %s343_s28 }
   0x8   :  { %v36_v5 = vld [vmem:[#allocation2 + $0x28] sm:$0xff]  ;;  %v31_v6 = vld [vmem:[#allocation2] sm:$0xff]  ;;  %v33_v7 = vld [vmem:[#allocation2 + $0x10] sm:$0xff]  ;;  %374 = vset.pattern.permute.xlu0 %v437_v15 }
   0x9   :  { %60 = vmatpush.msra.mxu1 %v37_v2  ;;  %100 = vmatpush.msra.mxu2 %v39_v3  ;;  %v41_v8 = vld [vmem:[#allocation2 + $0x50] sm:$0xff]  ;;  %v38_v10 = vld [vmem:[#allocation2 + $0x38] sm:$0xff]  ;;  %v35_v11 = vld [vmem:[#allocation2 + $0x20] sm:$0xff] }
   0xa   :  { %v32_v12 = vld [vmem:[#allocation2 + $0x8] sm:$0xff]  ;;  %v313_v13 = vld [vmem:[%s503_s2] sm:$0xff] }
   0xb   :  { %61 = vmatpush.msra.mxu1 %v34_v4  ;;  %101 = vmatpush.msra.mxu2 %v36_v5  ;;  %v314_v25 = vld [vmem:[%s503_s2 + $0x8] sm:$0xff]  ;;  %v227_v31 = vld [vmem:[%s502_s1] sm:$0xff] }
   0xc   :  { %317 = vperm.xlu0 %374, %v313_v13   ;;  %v228_v45 = vld [vmem:[%s502_s1 + $0x8] sm:$0xff]  ;;  %s438_s1 = smov [#allocation5]  }
   0xd   :  { %62 = vmatpush.msra.mxu1 %v31_v6  ;;  %102 = vmatpush.msra.mxu2 %v33_v7  ;;  %s341_s25 = sshll.u32 %s438_s1, 4  ;;  %s342_s25 = int_to_ptr.vmem [resolvable:$true] %s341_s25 }
   0xe   :  { %356 = vmatmul.msk.f32.vlgmr.msra.gmra.mxu1 %vm43_vm0, %v436_v9  ;;  %358 = vmatmul.msk.f32.vlgmr.msra.gmra.mxu2 %vm43_vm0, %v436_v9 }
   0xf   :  { %79 = vmatpush.msrb.mxu1 %v41_v8 }
  0x11   :  { %80 = vmatpush.msrb.mxu1 %v38_v10 }
  0x13   :  { %81 = vmatpush.msrb.mxu1 %v35_v11 }
  0x14   :  { %322 = vperm.xlu0 %374, %v314_v25  }
  0x15   :  { %82 = vmatpush.msrb.mxu1 %v32_v12 }
  0x16   :  { %357 = vmatmul.msk.f32.vlgmr.msrb.gmra.mxu1 %vm43_vm0, %v436_v9 }
  0x8b   :  { %v64_v14 = vpop.f32.mrf.mxu1 }
  0x8c   :  { %v107_v16 = vperm.slane %v64_v14, 0 }
  0x8e   :  { %v119_v17 = vsub.f32 %v40_v0, %v107_v16  ;;  %v116_v18 = vsub.f32 %v37_v2, %v107_v16  ;;  %v113_v20 = vsub.f32 %v34_v4, %v107_v16  ;;  %v110_v24 = vsub.f32 %v31_v6, %v107_v16  ;;  %v318_v2 = vpop.permute.xlu0 %317 }
  0x90   :  { %247 = vmatpush.msrb.mxu2 %v119_v17  ;;  %v131_v19 = vmul.f32 %v119_v17, %v119_v17  ;;  %v128_v23 = vmul.f32 %v116_v18, %v116_v18  ;;  %v125_v29 = vmul.f32 %v113_v20, %v113_v20  ;;  %v122_v32 = vmul.f32 %v110_v24, %v110_v24 }
  0x91   :  { %v104_v21 = vpop.f32.mrf.mxu2 }
  0x92   :  { %v109_v22 = vperm.slane %v104_v21, 0  ;;  %146 = vmatpush.msra.mxu3 %v131_v19  ;;  %248 = vmatpush.msrb.mxu2 %v116_v18 }
  0x93   :  { %v84_v26 = vpop.f32.mrf.mxu1 }
  0x94   :  { %v121_v27 = vsub.f32 %v42_v1, %v109_v22  ;;  %v108_v28 = vperm.slane %v84_v26, 0  ;;  %147 = vmatpush.msra.mxu3 %v128_v23  ;;  %249 = vmatpush.msrb.mxu2 %v113_v20  ;;  %v118_v30 = vsub.f32 %v39_v3, %v109_v22  ;;  %v115_v37 = vsub.f32 %v36_v5, %v109_v22 }
  0x95   :  { %v112_v40 = vsub.f32 %v33_v7, %v109_v22 }
  0x96   :  { %148 = vmatpush.msra.mxu3 %v125_v29  ;;  %250 = vmatpush.msrb.mxu2 %v110_v24  ;;  %v133_v33 = vmul.f32 %v121_v27, %v121_v27  ;;  %v120_v34 = vsub.f32 %v41_v8, %v108_v28  ;;  %v130_v35 = vmul.f32 %v118_v30, %v118_v30  ;;  %v323_v24 = vpop.permute.xlu0 %322 }
  0x97   :  { %v117_v36 = vsub.f32 %v38_v10, %v108_v28  ;;  %362 = vmatmul.msk.f32.vlgmr.msrb.gmra.mxu2 %vm43_vm0, %v227_v31  ;;  %v114_v39 = vsub.f32 %v35_v11, %v108_v28  ;;  %v127_v42 = vmul.f32 %v115_v37, %v115_v37  ;;  %v111_v43 = vsub.f32 %v32_v12, %v108_v28 }
  0x98   :  { %149 = vmatpush.msra.mxu3 %v122_v32  ;;  %186 = vmatpush.msra.mxu1 %v133_v33  ;;  %v132_v38 = vmul.f32 %v120_v34, %v120_v34  ;;  %v124_v46 = vmul.f32 %v112_v40, %v112_v40 }
  0x99   :  { %359 = vmatmul.msk.f32.vlgmr.msra.gmra.mxu3 %vm43_vm0, %v436_v9  ;;  %v129_v41 = vmul.f32 %v117_v36, %v117_v36  ;;  %v126_v44 = vmul.f32 %v114_v39, %v114_v39  ;;  %v123_v47 = vmul.f32 %v111_v43, %v111_v43 }
  0x9a   :  { %270 = vmatpush.msrb.mxu3 %v120_v34  ;;  %166 = vmatpush.msra.mxu0 %v132_v38 }
  0x9b   :  { %187 = vmatpush.msra.mxu1 %v130_v35 }
  0x9c   :  { %271 = vmatpush.msrb.mxu3 %v117_v36  ;;  %167 = vmatpush.msra.mxu0 %v129_v41 }
  0x9d   :  { %188 = vmatpush.msra.mxu1 %v127_v42 }
  0x9e   :  { %272 = vmatpush.msrb.mxu3 %v114_v39  ;;  %168 = vmatpush.msra.mxu0 %v126_v44 }
  0x9f   :  { %189 = vmatpush.msra.mxu1 %v124_v46  ;;  %363 = vmatmul.msk.f32.gmra.mxu2 %vm43_vm0, %v228_v45 }
  0xa0   :  { %361 = vmatmul.msk.f32.vlgmr.msra.gmra.mxu1 %vm43_vm0, %v436_v9  ;;  %273 = vmatpush.msrb.mxu3 %v111_v43 }
  0xa1   :  { %169 = vmatpush.msra.mxu0 %v123_v47  ;;  %364 = vmatmul.msk.f32.vlgmr.msrb.gmra.mxu3 %vm43_vm0, %v227_v31 }
  0xa2   :  { %360 = vmatmul.msk.f32.vlgmr.msra.gmra.mxu0 %vm43_vm0, %v436_v9 }
  0xa3   :  { %293 = vmatpush.msrb.mxu0 %v121_v27 }
  0xa5   :  { %294 = vmatpush.msrb.mxu0 %v118_v30 }
  0xa7   :  { %295 = vmatpush.msrb.mxu0 %v115_v37 }
  0xa9   :  { %296 = vmatpush.msrb.mxu0 %v112_v40  ;;  %365 = vmatmul.msk.f32.gmra.mxu3 %vm43_vm0, %v228_v45 }
  0xaa   :  { %366 = vmatmul.msk.f32.vlgmr.msrb.gmra.mxu0 %vm43_vm0, %v227_v31 }
  0xb2   :  { %367 = vmatmul.msk.f32.gmra.mxu0 %vm43_vm0, %v228_v45 }
 0x11a   :  { %v252_v57 = vpop.f32.mrf.mxu2 }
 0x11c   :  { %v151_v48 = vpop.f32.mrf.mxu3 }
 0x11d   :  { %v194_v49 = vadd.f32 1e-05, %v151_v48  ;;  %v191_v50 = vpop.f32.mrf.mxu1 }
 0x11e   :  { %v196_v51 = vadd.f32 1e-05, %v191_v50 }
 0x11f   :  { %375 = vrsqrt.f32 %v194_v49  ;;  %v171_v52 = vpop.f32.mrf.mxu0  ;;  %vm203_vm3 = vweird.f32 %v194_v49 }
 0x120   :  { %377 = vrsqrt.f32 %v196_v51  ;;  %v195_v53 = vadd.f32 1e-05, %v171_v52  ;;  %vm223_vm4 = vweird.f32 %v196_v51 }
 0x122   :  { %379 = vrsqrt.f32 %v195_v53  ;;  %v255_v12 = vpop.f32.mrf.mxu2  ;;  %vm213_vm8 = vweird.f32 %v195_v53 }
 0x124   :  { %v275_v0 = vpop.f32.mrf.mxu3 }
 0x125   :  { %v376_v54 = vpop.eup %375 }
 0x126   :  { %v378_v55 = vpop.eup %377  ;;  %v198_v56 = vmul.f32 %v376_v54, %v194_v49  ;;  %vm204_vm1 = vweird.f32 %v376_v54 }
 0x127   :  { %v218_v58 = vmul.f32 %v378_v55, %v196_v51  ;;  %v298_v59 = vpop.f32.mrf.mxu0  ;;  %vm224_vm2 = vweird.f32 %v378_v55  ;;  %vm205_vm5 = vmor %vm203_vm3, %vm204_vm1 }
 0x128   :  { %v380_v60 = vpop.eup %379  ;;  %v199_v61 = vmul.f32 %v376_v54, %v198_v56  ;;  %vm225_vm7 = vmor %vm223_vm4, %vm224_vm2 }
 0x129   :  { %v219_v62 = vmul.f32 %v378_v55, %v218_v58  ;;  %v208_v63 = vmul.f32 %v380_v60, %v195_v53  ;;  %vm214_vm6 = vweird.f32 %v380_v60 }
 0x12a   :  { %v200_v1 = vmul.f32 0.5, %v199_v61  ;;  %vm215_vm9 = vmor %vm213_vm8, %vm214_vm6 }
 0x12b   :  { %v220_v3 = vmul.f32 0.5, %v219_v62  ;;  %v209_v4 = vmul.f32 %v380_v60, %v208_v63 }
 0x12c   :  { %v201_v5 = vsub.f32 1.5, %v200_v1  ;;  %v278_v21 = vpop.f32.mrf.mxu3 }
 0x12d   :  { %v221_v6 = vsub.f32 1.5, %v220_v3  ;;  %v210_v7 = vmul.f32 0.5, %v209_v4 }
 0x12e   :  { %v202_v8 = vmul.f32 %v376_v54, %v201_v5 }
 0x12f   :  { %v211_v9 = vsub.f32 1.5, %v210_v7  ;;  %v222_v10 = vmul.f32 %v378_v55, %v221_v6  ;;  %v301_v16 = vpop.f32.mrf.mxu0 }
 0x130   :  { %v206_v11 = vsel %vm205_vm5, %v376_v54, %v202_v8 }
 0x131   :  { %v304_v13 = vperm.slane %v206_v11, 0  ;;  %v226_v14 = vsel %vm225_vm7, %v378_v55, %v222_v10  ;;  %v212_v15 = vmul.f32 %v380_v60, %v211_v9 }
 0x132   :  { %v306_v17 = vperm.slane %v226_v14, 0 }
 0x133   :  { %v307_v18 = vmul.f32 %v304_v13, %v252_v57  ;;  %v216_v19 = vsel %vm215_vm9, %v380_v60, %v212_v15  ;;  %v310_v20 = vmul.f32 %v304_v13, %v255_v12 }
 0x134   :  { %v309_v22 = vmul.f32 %v306_v17, %v298_v59  ;;  %v305_v23 = vperm.slane %v216_v19, 0  ;;  %v312_v25 = vmul.f32 %v306_v17, %v301_v16 }
 0x135   :  { %v325_v26 = vadd.f32 %v318_v2, %v307_v18  ;;  %v328_v27 = vadd.f32 %v323_v24, %v310_v20 }
 0x136   :  { %v327_v28 = vadd.f32 %v318_v2, %v309_v22  ;;  %v308_v29 = vmul.f32 %v305_v23, %v275_v0  ;;  %v311_v30 = vmul.f32 %v305_v23, %v278_v21  ;;  %v330_v31 = vadd.f32 %v323_v24, %v312_v25 }
 0x137   :  { %331 = vst [vmem:[#allocation5] sm:$0xff] %v325_v26 }
 0x138   :  { %333 = vst [vmem:[#allocation5 + $0x10] sm:$0xff] %v327_v28  ;;  %v326_v32 = vadd.f32 %v318_v2, %v308_v29  ;;  %v329_v33 = vadd.f32 %v323_v24, %v311_v30 }
 0x139   :  { %334 = vst [vmem:[#allocation5 + $0x18] sm:$0xff] %v328_v27 }
 0x13a   :  { %332 = vst [vmem:[#allocation5 + $0x8] sm:$0xff] %v326_v32 }
 0x13b   :  { %336 = vst [vmem:[#allocation5 + $0x28] sm:$0xff] %v330_v31 }
 0x13c   :  { %335 = vst [vmem:[#allocation5 + $0x20] sm:$0xff] %v329_v33 }
 0x13d   :  { %349 = dma.vmem_to_hbm [thread:$0]  %s342_s25, 768, %s344_s28, [#allocation4], %s434_s17, %s434_s17, %s435_s18  }
 0x13e   :  { %431 = dma.done.wait [#allocation4], 768  }
 0x13f   :  { %432 = vsyncadd [#allocation4], 4294966528 }
 0x140   :  { %354 = vsyncpa [#allocation3], 1 }
 0x141   :  { %355 = vsyncpa [#allocation4], 1 }

</bundles_post_ra>
